<compile_context>
chip_gen: v7x
topology: tpu7x:2x2x1
jax: 0.10.0
libtpu: 0.0.40
codegen_flags: <defaults>
</compile_context>

<pallas_src>
import jax
import jax.numpy as jnp
from jax.experimental import pallas as pl
from jax.experimental.pallas import tpu as pltpu

HIDDEN = 256
OUT_PAD = 128  # lane-dense padded output width; real q-value lives in column 0


def _round_up(x, m):
    return (x + m - 1) // m * m


def critic_kernel(s_ref, a_ref, w1s_ref, w1a_ref, b1_ref, w2_ref, b2_ref,
                  w3_ref, b3_ref, out_ref):
    # Layer 1: concat(state, action) @ W1 expressed as two matmuls (no concat).
    h1 = jnp.dot(s_ref[...], w1s_ref[...], preferred_element_type=jnp.float32)
    h1 = h1 + jnp.dot(a_ref[...], w1a_ref[...],
                      preferred_element_type=jnp.float32)
    h1 = jnp.maximum(h1 + b1_ref[...], 0.0)            # f32 bias/ReLU on VPU

    # Layer 2: (TB, 256) @ (256, 256)
    h2 = jnp.dot(h1.astype(w2_ref.dtype), w2_ref[...],
                 preferred_element_type=jnp.float32)
    h2 = jnp.maximum(h2 + b2_ref[...], 0.0)

    # Output layer, lane-padded to 128 cols (padded cols of W3/b3 are zero).
    q = jnp.dot(h2.astype(w3_ref.dtype), w3_ref[...],
                preferred_element_type=jnp.float32)
    out_ref[...] = (q + b3_ref[...]).astype(out_ref.dtype)


def critic_forward(state, action, params, *, block_b=256):
    """state: (B, S) f32, action: (B, A) f32 -> (B, 1) f32."""
    w1, b1, w2, b2, w3, b3 = params        # w1:(S+A,256) b1:(1,256) w2:(256,256)
    B, S = state.shape                      # b2:(1,256)   w3:(256,1) b3:(1,1)
    A = action.shape[1]
    out_cols = w3.shape[1]

    # bf16 operands for the MXU fast path (accumulation stays f32 in-kernel).
    cdt = jnp.bfloat16
    w1s = w1[:S].astype(cdt)
    w1a = w1[S:].astype(cdt)
    w2c = w2.astype(cdt)
    # Zero-pad output layer to 128 lanes -> unmasked, lane-dense stores.
    w3p = jnp.zeros((HIDDEN, OUT_PAD), cdt).at[:, :out_cols].set(w3.astype(cdt))
    b3p = jnp.zeros((1, OUT_PAD), jnp.float32).at[:, :out_cols].set(b3)

    # Batch tiling: TB rows per grid step; pad B up so every block is full.
    tb = block_b if B >= block_b else _round_up(B, 8)
    b_pad = _round_up(B, tb)
    s_p = jnp.zeros((b_pad, S), cdt).at[:B].set(state.astype(cdt))
    a_p = jnp.zeros((b_pad, A), cdt).at[:B].set(action.astype(cdt))

    grid = (b_pad // tb,)

    def batch_spec(cols):
        return pl.BlockSpec((tb, cols), lambda i: (i, 0))

    def const_spec(arr):
        return pl.BlockSpec(arr.shape, lambda i: (0, 0))

    flops = 2 * b_pad * ((S + A) * HIDDEN + HIDDEN * HIDDEN + HIDDEN * OUT_PAD)
    bytes_accessed = (s_p.size * 2 + a_p.size * 2
                      + (w1s.size + w1a.size + w2c.size + w3p.size) * 2
                      + (b1.size + b2.size + b3p.size) * 4
                      + b_pad * OUT_PAD * 4)

    out = pl.pallas_call(
        critic_kernel,
        out_shape=jax.ShapeDtypeStruct((b_pad, OUT_PAD), jnp.float32),
        grid_spec=pl.GridSpec(
            grid=grid,
            in_specs=[batch_spec(S), batch_spec(A),
                      const_spec(w1s), const_spec(w1a), const_spec(b1),
                      const_spec(w2c), const_spec(b2),
                      const_spec(w3p), const_spec(b3p)],
            out_specs=pl.BlockSpec((tb, OUT_PAD), lambda i: (i, 0)),
        ),
        compiler_params=pltpu.CompilerParams(
            dimension_semantics=("parallel",)),
        cost_estimate=pl.CostEstimate(flops=flops, transcendentals=0,
                                      bytes_accessed=bytes_accessed),
    )(s_p, a_p, w1s, w1a, b1, w2c, b2, w3p, b3p)

    return out[:B, :out_cols]


def init_critic_params(key, state_dim, action_dim, hidden=HIDDEN):
    """Deterministic synthetic init (PyTorch-Linear-like uniform), f32 masters."""
    ks = jax.random.split(key, 6)

    def linear(kw, kb, fan_in, fan_out):
        bound = 1.0 / jnp.sqrt(fan_in)
        w = jax.random.uniform(kw, (fan_in, fan_out), jnp.float32, -bound, bound)
        b = jax.random.uniform(kb, (1, fan_out), jnp.float32, -bound, bound)
        return w, b

    w1, b1 = linear(ks[0], ks[1], state_dim + action_dim, hidden)
    w2, b2 = linear(ks[2], ks[3], hidden, hidden)
    w3, b3 = linear(ks[4], ks[5], hidden, 1)
    return (w1, b1, w2, b2, w3, b3)


def critic_reference(state, action, params):
    """Pure-JAX reference mirroring the kernel's bf16-operand / f32-accum math."""
    w1, b1, w2, b2, w3, b3 = params
    S = state.shape[1]
    bf = jnp.bfloat16
    h1 = (jnp.dot(state.astype(bf), w1[:S].astype(bf),
                  preferred_element_type=jnp.float32)
          + jnp.dot(action.astype(bf), w1[S:].astype(bf),
                    preferred_element_type=jnp.float32))
    h1 = jnp.maximum(h1 + b1, 0.0)
    h2 = jnp.dot(h1.astype(bf), w2.astype(bf),
                 preferred_element_type=jnp.float32)
    h2 = jnp.maximum(h2 + b2, 0.0)
    q = jnp.dot(h2.astype(bf), w3.astype(bf),
                preferred_element_type=jnp.float32)
    return q + b3


if __name__ == "__main__":
    key = jax.random.PRNGKey(0)
    k_params, k_state, k_action = jax.random.split(key, 3)

    batch = 16
    state_dim = 32    # small stand-in for the simulator observation dim
    action_dim = 2    # (acceleration, yaw rate)

    params = init_critic_params(k_params, state_dim, action_dim)
    state = jax.random.normal(k_state, (batch, state_dim), dtype=jnp.float32)
    action = jax.random.normal(k_action, (batch, action_dim), dtype=jnp.float32)

    q = critic_forward(state, action, params)
    q = jax.block_until_ready(q)

    ref = critic_reference(state, action, params)
    assert q.shape == (batch, 1)
    assert jnp.allclose(q, ref, atol=1e-3, rtol=1e-3), \
        float(jnp.max(jnp.abs(q - ref)))

    print("KERNEL_OK")
</pallas_src>

<mosaic_0001>
module attributes {stable_mosaic.version = 11 : i64} {
  func.func @critic_kernel(%arg0: i32, %arg1: memref<16x32xbf16, #tpu.memory_space<vmem>>, %arg2: memref<16x2xbf16, #tpu.memory_space<vmem>>, %arg3: memref<32x256xbf16, #tpu.memory_space<vmem>>, %arg4: memref<2x256xbf16, #tpu.memory_space<vmem>>, %arg5: memref<1x256xf32, #tpu.memory_space<vmem>>, %arg6: memref<256x256xbf16, #tpu.memory_space<vmem>>, %arg7: memref<1x256xf32, #tpu.memory_space<vmem>>, %arg8: memref<256x128xbf16, #tpu.memory_space<vmem>>, %arg9: memref<1x128xf32, #tpu.memory_space<vmem>>, %arg10: memref<16x128xf32, #tpu.memory_space<vmem>>) attributes {dimension_semantics = [#tpu.dimension_semantics<parallel>], iteration_bounds = array<i64: 1>, scalar_prefetch = 0 : i64, scratch_operands = 0 : i64, tpu.core_type = #tpu.core_type<tc>, window_params = [{transform_indices = @transform_0, window_bounds = array<i64: 16, 32>}, {transform_indices = @transform_1, window_bounds = array<i64: 16, 2>}, {pipeline_mode = #tpu.pipeline_mode<synchronous>, transform_indices = @transform_2, window_bounds = array<i64: 32, 256>}, {pipeline_mode = #tpu.pipeline_mode<synchronous>, transform_indices = @transform_3, window_bounds = array<i64: 2, 256>}, {pipeline_mode = #tpu.pipeline_mode<synchronous>, transform_indices = @transform_4, window_bounds = array<i64: 1, 256>}, {pipeline_mode = #tpu.pipeline_mode<synchronous>, transform_indices = @transform_5, window_bounds = array<i64: 256, 256>}, {pipeline_mode = #tpu.pipeline_mode<synchronous>, transform_indices = @transform_6, window_bounds = array<i64: 1, 256>}, {pipeline_mode = #tpu.pipeline_mode<synchronous>, transform_indices = @transform_7, window_bounds = array<i64: 256, 128>}, {pipeline_mode = #tpu.pipeline_mode<synchronous>, transform_indices = @transform_8, window_bounds = array<i64: 1, 128>}, {transform_indices = @transform_9, window_bounds = array<i64: 16, 128>}]} {
    %c0 = arith.constant 0 : index
    %c0_0 = arith.constant 0 : index
    %0 = vector.load %arg1[%c0, %c0_0] : memref<16x32xbf16, #tpu.memory_space<vmem>>, vector<16x32xbf16>
    %c0_1 = arith.constant 0 : index
    %c0_2 = arith.constant 0 : index
    %1 = vector.load %arg3[%c0_1, %c0_2] : memref<32x256xbf16, #tpu.memory_space<vmem>>, vector<32x256xbf16>
    %cst = arith.constant dense<0.000000e+00> : vector<16x256xf32>
    %2 = tpu.matmul %0, %1, %cst {dimension_numbers = #tpu.dot_dimension_numbers<[1], [0], [0], [1], [0, 0, 1, 1], [], []>} : vector<16x32xbf16>, vector<32x256xbf16>, vector<16x256xf32> -> vector<16x256xf32>
    %c0_3 = arith.constant 0 : index
    %c0_4 = arith.constant 0 : index
    %3 = vector.load %arg2[%c0_3, %c0_4] : memref<16x2xbf16, #tpu.memory_space<vmem>>, vector<16x2xbf16>
    %c0_5 = arith.constant 0 : index
    %c0_6 = arith.constant 0 : index
    %4 = vector.load %arg4[%c0_5, %c0_6] : memref<2x256xbf16, #tpu.memory_space<vmem>>, vector<2x256xbf16>
    %cst_7 = arith.constant dense<0.000000e+00> : vector<16x256xf32>
    %5 = tpu.matmul %3, %4, %cst_7 {dimension_numbers = #tpu.dot_dimension_numbers<[1], [0], [0], [1], [0, 0, 1, 1], [], []>} : vector<16x2xbf16>, vector<2x256xbf16>, vector<16x256xf32> -> vector<16x256xf32>
    %6 = arith.addf %2, %5 : vector<16x256xf32>
    %c0_8 = arith.constant 0 : index
    %c0_9 = arith.constant 0 : index
    %7 = vector.load %arg5[%c0_8, %c0_9] : memref<1x256xf32, #tpu.memory_space<vmem>>, vector<1x256xf32>
    %8 = vector.broadcast %7 : vector<1x256xf32> to vector<16x256xf32>
    %9 = arith.addf %6, %8 : vector<16x256xf32>
    %cst_10 = arith.constant 0.000000e+00 : f32
    %10 = vector.broadcast %cst_10 : f32 to vector<16x256xf32>
    %11 = arith.maximumf %9, %10 : vector<16x256xf32>
    %12 = arith.truncf %11 : vector<16x256xf32> to vector<16x256xbf16>
    %c0_11 = arith.constant 0 : index
    %c0_12 = arith.constant 0 : index
    %13 = vector.load %arg6[%c0_11, %c0_12] : memref<256x256xbf16, #tpu.memory_space<vmem>>, vector<256x256xbf16>
    %cst_13 = arith.constant dense<0.000000e+00> : vector<16x256xf32>
    %14 = tpu.matmul %12, %13, %cst_13 {dimension_numbers = #tpu.dot_dimension_numbers<[1], [0], [0], [1], [0, 0, 1, 1], [], []>} : vector<16x256xbf16>, vector<256x256xbf16>, vector<16x256xf32> -> vector<16x256xf32>
    %c0_14 = arith.constant 0 : index
    %c0_15 = arith.constant 0 : index
    %15 = vector.load %arg7[%c0_14, %c0_15] : memref<1x256xf32, #tpu.memory_space<vmem>>, vector<1x256xf32>
    %16 = vector.broadcast %15 : vector<1x256xf32> to vector<16x256xf32>
    %17 = arith.addf %14, %16 : vector<16x256xf32>
    %cst_16 = arith.constant 0.000000e+00 : f32
    %18 = vector.broadcast %cst_16 : f32 to vector<16x256xf32>
    %19 = arith.maximumf %17, %18 : vector<16x256xf32>
    %20 = arith.truncf %19 : vector<16x256xf32> to vector<16x256xbf16>
    %c0_17 = arith.constant 0 : index
    %c0_18 = arith.constant 0 : index
    %21 = vector.load %arg8[%c0_17, %c0_18] : memref<256x128xbf16, #tpu.memory_space<vmem>>, vector<256x128xbf16>
    %cst_19 = arith.constant dense<0.000000e+00> : vector<16x128xf32>
    %22 = tpu.matmul %20, %21, %cst_19 {dimension_numbers = #tpu.dot_dimension_numbers<[1], [0], [0], [1], [0, 0, 1, 1], [], []>} : vector<16x256xbf16>, vector<256x128xbf16>, vector<16x128xf32> -> vector<16x128xf32>
    %c0_20 = arith.constant 0 : index
    %c0_21 = arith.constant 0 : index
    %23 = vector.load %arg9[%c0_20, %c0_21] : memref<1x128xf32, #tpu.memory_space<vmem>>, vector<1x128xf32>
    %24 = vector.broadcast %23 : vector<1x128xf32> to vector<16x128xf32>
    %25 = arith.addf %22, %24 : vector<16x128xf32>
    %c0_22 = arith.constant 0 : index
    %c0_23 = arith.constant 0 : index
    %26 = vector.load %arg10[%c0_22, %c0_23] : memref<16x128xf32, #tpu.memory_space<vmem>>, vector<16x128xf32>
    tpu.vector_store %arg10[%c0_22, %c0_23], %25 {strides = array<i32>} : memref<16x128xf32, #tpu.memory_space<vmem>>, vector<16x128xf32>,
    return
  }
  func.func @transform_0(%arg0: i32) -> (i32, i32) {
    %c0_i32 = arith.constant 0 : i32
    %c0_i32_0 = arith.constant 0 : i32
    return %arg0, %c0_i32 : i32, i32
  }
  func.func @transform_1(%arg0: i32) -> (i32, i32) {
    %c0_i32 = arith.constant 0 : i32
    %c0_i32_0 = arith.constant 0 : i32
    return %arg0, %c0_i32 : i32, i32
  }
  func.func @transform_2(%arg0: i32) -> (i32, i32) {
    %c0_i32 = arith.constant 0 : i32
    %c0_i32_0 = arith.constant 0 : i32
    %c0_i32_1 = arith.constant 0 : i32
    return %c0_i32, %c0_i32_0 : i32, i32
  }
  func.func @transform_3(%arg0: i32) -> (i32, i32) {
    %c0_i32 = arith.constant 0 : i32
    %c0_i32_0 = arith.constant 0 : i32
    %c0_i32_1 = arith.constant 0 : i32
    return %c0_i32, %c0_i32_0 : i32, i32
  }
  func.func @transform_4(%arg0: i32) -> (i32, i32) {
    %c0_i32 = arith.constant 0 : i32
    %c0_i32_0 = arith.constant 0 : i32
    %c0_i32_1 = arith.constant 0 : i32
    return %c0_i32, %c0_i32_0 : i32, i32
  }
  func.func @transform_5(%arg0: i32) -> (i32, i32) {
    %c0_i32 = arith.constant 0 : i32
    %c0_i32_0 = arith.constant 0 : i32
    %c0_i32_1 = arith.constant 0 : i32
    return %c0_i32, %c0_i32_0 : i32, i32
  }
  func.func @transform_6(%arg0: i32) -> (i32, i32) {
    %c0_i32 = arith.constant 0 : i32
    %c0_i32_0 = arith.constant 0 : i32
    %c0_i32_1 = arith.constant 0 : i32
    return %c0_i32, %c0_i32_0 : i32, i32
  }
  func.func @transform_7(%arg0: i32) -> (i32, i32) {
    %c0_i32 = arith.constant 0 : i32
    %c0_i32_0 = arith.constant 0 : i32
    %c0_i32_1 = arith.constant 0 : i32
    return %c0_i32, %c0_i32_0 : i32, i32
  }
  func.func @transform_8(%arg0: i32) -> (i32, i32) {
    %c0_i32 = arith.constant 0 : i32
    %c0_i32_0 = arith.constant 0 : i32
    %c0_i32_1 = arith.constant 0 : i32
    return %c0_i32, %c0_i32_0 : i32, i32
  }
  func.func @transform_9(%arg0: i32) -> (i32, i32) {
    %c0_i32 = arith.constant 0 : i32
    %c0_i32_0 = arith.constant 0 : i32
    return %arg0, %c0_i32 : i32, i32
  }
}

</mosaic_0001>

<bundles_post_ra>
// kernel: tpu_custom_call.1
= control target key start
LH: loop header
LB: loop body
LE: loop exit
PB: predicated region body
PF: predicated region fallthrough
CT: control target
= control target key end

     0   :  { %14 = vsyncpa [#allocation3], 0  ;;  %s1117_s0 = inlined_call_operand.vmem [shape: bf16[16,32], index: 0, kind: input, shape index: {}]   ;;  %s1118_s1 = inlined_call_operand.vmem [shape: bf16[16,2], index: 1, kind: input, shape index: {}]   ;;  %s1119_s2 = inlined_call_operand.hbm [shape: bf16[32,256], index: 2, kind: input, shape index: {}]   ;;  %s1120_s3 = inlined_call_operand.vmem [shape: bf16[2,256], index: 3, kind: input, shape index: {}]   ;;  %s1121_s4 = inlined_call_operand.vmem [shape: f32[1,256], index: 4, kind: input, shape index: {}]   ;;  %s1122_s5 = inlined_call_operand.hbm [shape: bf16[256,256], index: 5, kind: input, shape index: {}]   ;;  %s1123_s6 = inlined_call_operand.vmem [shape: f32[1,256], index: 6, kind: input, shape index: {}]   ;;  %s1124_s7 = inlined_call_operand.hbm [shape: bf16[256,128], index: 7, kind: input, shape index: {}]   ;;  %s1125_s8 = inlined_call_operand.vmem [shape: f32[1,128], index: 8, kind: input, shape index: {}]   ;;  %s1126_s9 = inlined_call_operand.hbm [shape: f32[16,128], index: 9, kind: output, shape index: {}]  }
   0x1   :  { %15 = vsyncpa [#allocation6], 0 }
   0x2   :  { %16 = vsyncpa [#allocation4], 0  ;;  %s970_s30 = smov [#allocation5]   ;;  %s971_s11 = smov [#allocation2]  }
   0x3   :  { %s42_s10 = sshll.u32 %s970_s30, 4  ;;  %s26_s12 = sshll.u32 %s971_s11, 4  ;;  %s43_s10 = int_to_ptr.vmem [resolvable:$true] %s42_s10  ;;  %s1030_s12 = int_to_ptr.vmem [resolvable:$true] %s26_s12 }
   0x4   :  { %s876_s15 = scalar_lea.hbm %s1122_s5, 4096 }
   0x5   :  { %p877_p0 = scmp.ne.s32.totalorder %s1122_s5, %s876_s15  ;;  %p880_p1 = scmp.lt.u32.totalorder %s876_s15, %s1122_s5 }
   0x7   :  { %p882_p2 = pnand %p880_p1, %p877_p0 }
   0x9   :  { %885 = shalt.err (!%p882_p2)
}
   0xa   :  { %s886_s20 = scalar_lea.vmem %s43_s10, 4096  ;;  %p891_p4 = scmp.lt.s32.totalorder %s43_s10, %s43_s10 }
   0xb   :  { %p887_p3 = scmp.ne.s32.totalorder %s43_s10, %s886_s20  ;;  %p892_p5 = scmp.lt.s32.totalorder %s886_s20, %s886_s20 }
   0xd   :  { %p893_p6 = por %p892_p5, %p891_p4 }
   0xf   :  { %p894_p7 = pnand %p893_p6, %p887_p3 }
  0x11   :  { %897 = shalt.err (!%p894_p7)
}
  0x12   :  { %s972_s21 = smov 128   ;;  %s973_s22 = smov 8  }
  0x13   :  { %48 = dma.hbm_to_vmem [thread:$0]  %s1122_s5, 4096, %s43_s10, [#allocation6], %s972_s21, %s972_s21, %s973_s22  }
  0x14   :  { %s898_s27 = scalar_lea.hbm %s1119_s2, 512 }
  0x15   :  { %p899_p8 = scmp.ne.s32.totalorder %s1119_s2, %s898_s27  ;;  %p902_p9 = scmp.lt.u32.totalorder %s898_s27, %s1119_s2 }
  0x17   :  { %p904_p10 = pnand %p902_p9, %p899_p8 }
  0x19   :  { %907 = shalt.err (!%p904_p10)
}
  0x1a   :  { %s908_s13 = scalar_lea.vmem %s1030_s12, 512  ;;  %p913_p12 = scmp.lt.s32.totalorder %s1030_s12, %s1030_s12 }
  0x1b   :  { %p909_p11 = scmp.ne.s32.totalorder %s1030_s12, %s908_s13  ;;  %p914_p13 = scmp.lt.s32.totalorder %s908_s13, %s908_s13 }
  0x1d   :  { %p915_p0 = por %p914_p13, %p913_p12 }
  0x1f   :  { %p916_p1 = pnand %p915_p0, %p909_p11 }
  0x21   :  { %919 = shalt.err (!%p916_p1)
}
  0x22   :  { %32 = dma.hbm_to_vmem [thread:$0]  %s1119_s2, 512, %s1030_s12, [#allocation3], %s972_s21, %s972_s21, %s973_s22  }
  0x23   :  { %s974_s14 = smov [#allocation7]   ;;  %s920_s18 = scalar_lea.hbm %s1124_s7, 2048 }
  0x24   :  { %s56_s15 = sshll.u32 %s974_s14, 4  ;;  %p921_p2 = scmp.ne.s32.totalorder %s1124_s7, %s920_s18  ;;  %s57_s15 = int_to_ptr.vmem [resolvable:$true] %s56_s15 }
  0x25   :  { %p924_p3 = scmp.lt.u32.totalorder %s920_s18, %s1124_s7 }
  0x27   :  { %p926_p4 = pnand %p924_p3, %p921_p2 }
  0x29   :  { %929 = shalt.err (!%p926_p4)
}
  0x2a   :  { %s930_s25 = scalar_lea.vmem %s57_s15, 2048  ;;  %p935_p6 = scmp.lt.s32.totalorder %s57_s15, %s57_s15 }
  0x2b   :  { %p931_p5 = scmp.ne.s32.totalorder %s57_s15, %s930_s25  ;;  %p936_p7 = scmp.lt.s32.totalorder %s930_s25, %s930_s25 }
  0x2d   :  { %p937_p8 = por %p936_p7, %p935_p6 }
  0x2f   :  { %p938_p9 = pnand %p937_p8, %p931_p5 }
  0x31   :  { %941 = shalt.err (!%p938_p9)
}
  0x32   :  { %s975_s2 = smov 64   ;;  %s976_s12 = smov 4  }
  0x33   :  { %62 = dma.hbm_to_vmem [thread:$0]  %s1124_s7, 2048, %s57_s15, [#allocation6], %s975_s2, %s975_s2, %s976_s12  }
  0x34   :  { %964 = dma.done.wait [#allocation3], 512  }
  0x35   :  { %965 = vsyncadd [#allocation3], 4294966784 }
  0x36   :  { %966 = dma.done.wait [#allocation6], 6144  }
  0x37   :  { %967 = vsyncadd [#allocation6], 4294961152  ;;  %v101_v0 = vlaneseq  ;;  %v977_v1 = vmov 1966171168   ;;  %v978_v3 = vmov 0   ;;  %vm116_vm0 = vcmask 1040384  }
  0x38   :  { %v99_v2 = vunpack.c.l.s4 %v977_v1  ;;  %155 = vmatprep.mubr.bf16.mxu0 %v978_v3  ;;  %v710_v7 = vld.sshfl [vmem:[%s1120_s3] sm:$0x11 pattern:$0x75316420]  ;;  %v807_v12 = vld [vmem:[#allocation2 + $0x4] ss:$8 sps:$4 sm:$0xff]  }
  0x39   :  { %v1079_v4 = vshrl.u32 %v101_v0, 7  ;;  %v97_v8 = vcombine.high %v710_v7, %v710_v7  ;;  %v804_v13 = vld [vmem:[%s1118_s1] sm:$0xff]   ;;  %vm112_vm1 = vcmask 15360   ;;  %v810_v17 = vld [vmem:[#allocation2 + $0x14] ss:$8 sps:$4 sm:$0xff]   ;;  %vm191_vm2 = vcmask 261120  }
  0x3a   :  { %v100_v5 = vunpack.c.0.s8 %v99_v2  ;;  %v805_v14 = vld [vmem:[#allocation2] ss:$8 sps:$4 sm:$0xff]   ;;  %v812_v15 = vld [vmem:[#allocation5 + $0x4] ss:$8 sps:$4 sm:$0xff]   ;;  %v815_v18 = vld [vmem:[#allocation5 + $0x14] ss:$8 sps:$4 sm:$0xff]  }
  0x3b   :  { %v814_v16 = vld [vmem:[#allocation5] ss:$8 sps:$4 sm:$0xff]   ;;  %464 = vmatprep.subr.bf16.mxu1 %v812_v15  ;;  %v817_v19 = vld [vmem:[#allocation5 + $0x10] ss:$8 sps:$4 sm:$0xff]   ;;  %v818_v21 = vld [vmem:[#allocation5 + $0x24] ss:$8 sps:$4 sm:$0xff]  }
  0x3c   :  { %v103_v6 = vsub.s32 %v100_v5, %v1079_v4  ;;  %465 = vmatpush1.bf16.msra.mxu1 %v814_v16  ;;  %v808_v20 = vld [vmem:[#allocation2 + $0x10] ss:$8 sps:$4 sm:$0xff]   ;;  %v820_v22 = vld [vmem:[#allocation5 + $0x20] ss:$8 sps:$4 sm:$0xff]   ;;  %v821_v23 = vld [vmem:[#allocation5 + $0x34] ss:$8 sps:$4 sm:$0xff]  }
  0x3d   :  { %466 = vmatprep.subr.bf16.mxu1 %v815_v18  ;;  %v811_v24 = vld [vmem:[%s1117_s0] sm:$0xff]   ;;  %v823_v25 = vld [vmem:[#allocation5 + $0x30] ss:$8 sps:$4 sm:$0xff]   ;;  %v827_v28 = vld [vmem:[#allocation5 + $0x54] ss:$8 sps:$4 sm:$0xff]   ;;  %v242_v61 = vsub.s32 0, %v1079_v4 }
  0x3e   :  { %v104_v9 = vrot.slane %v710_v7, %v103_v6  ;;  %v111_v10 = vrot.slane %v97_v8, %v103_v6  ;;  %v824_v26 = vld [vmem:[#allocation5 + $0x44] ss:$8 sps:$4 sm:$0xff]   ;;  %v826_v27 = vld [vmem:[#allocation5 + $0x40] ss:$8 sps:$4 sm:$0xff]   ;;  %v829_v29 = vld [vmem:[#allocation5 + $0x50] ss:$8 sps:$4 sm:$0xff]  }
  0x3f   :  { %v830_v30 = vld [vmem:[#allocation5 + $0x64] ss:$8 sps:$4 sm:$0xff]   ;;  %v832_v31 = vld [vmem:[#allocation5 + $0x60] ss:$8 sps:$4 sm:$0xff]   ;;  %v833_v32 = vld [vmem:[#allocation5 + $0x74] ss:$8 sps:$4 sm:$0xff]  }
  0x40   :  { %v118_v11 = vsel %vm116_vm0, %v104_v9, 0  ;;  %711 = vmatprep.subr.msk.bf16.mxu0 %vm116_vm0, %v111_v10  ;;  %467 = vmatpush1.bf16.msra.mxu1 %v817_v19  ;;  %v835_v33 = vld [vmem:[#allocation5 + $0x70] ss:$8 sps:$4 sm:$0xff]   ;;  %v836_v34 = vld [vmem:[#allocation5 + $0x84] ss:$8 sps:$4 sm:$0xff]   ;;  %v246_v63 = vsub.s32 1, %v1079_v4 }
  0x41   :  { %124 = vmatpush1.bf16.msra.mxu0 %v118_v11  ;;  %468 = vmatprep.subr.bf16.mxu1 %v818_v21  ;;  %v838_v35 = vld [vmem:[#allocation5 + $0x80] ss:$8 sps:$4 sm:$0xff]   ;;  %v839_v36 = vld [vmem:[#allocation5 + $0x94] ss:$8 sps:$4 sm:$0xff]   ;;  %v841_v37 = vld [vmem:[#allocation5 + $0x90] ss:$8 sps:$4 sm:$0xff]  }
  0x42   :  { %195 = vmatprep.subr.bf16.mxu0 %v807_v12  ;;  %v842_v38 = vld [vmem:[#allocation5 + $0xa4] ss:$8 sps:$4 sm:$0xff]   ;;  %v844_v39 = vld [vmem:[#allocation5 + $0xa0] ss:$8 sps:$4 sm:$0xff]   ;;  %v845_v40 = vld [vmem:[#allocation5 + $0xb4] ss:$8 sps:$4 sm:$0xff]  }
  0x43   :  { %v847_v41 = vld [vmem:[#allocation5 + $0xb0] ss:$8 sps:$4 sm:$0xff]   ;;  %v848_v42 = vld [vmem:[#allocation5 + $0xc4] ss:$8 sps:$4 sm:$0xff]   ;;  %v850_v43 = vld [vmem:[#allocation5 + $0xc0] ss:$8 sps:$4 sm:$0xff]  }
  0x44   :  { %712 = vmatmul.mubr.msk.bf16.vlgmr.msra.gmra.mrb[0].mxu0 %vm112_vm1, %v804_v13  ;;  %469 = vmatpush1.bf16.msra.mxu1 %v820_v22  ;;  %v851_v44 = vld [vmem:[#allocation5 + $0xd4] ss:$8 sps:$4 sm:$0xff]   ;;  %v853_v45 = vld [vmem:[#allocation5 + $0xd0] ss:$8 sps:$4 sm:$0xff]   ;;  %v854_v46 = vld [vmem:[#allocation5 + $0xe4] ss:$8 sps:$4 sm:$0xff]  }
  0x45   :  { %196 = vmatpush1.bf16.msra.mxu0 %v805_v14  ;;  %227 = vmatprep.mubr.bf16.mxu0 %v978_v3  ;;  %v856_v47 = vld [vmem:[#allocation5 + $0xe0] ss:$8 sps:$4 sm:$0xff]   ;;  %v857_v48 = vld [vmem:[#allocation5 + $0xf4] ss:$8 sps:$4 sm:$0xff]   ;;  %v859_v49 = vld [vmem:[#allocation5 + $0xf0] ss:$8 sps:$4 sm:$0xff]  }
  0x46   :  { %197 = vmatprep.subr.bf16.mxu0 %v810_v17  ;;  %470 = vmatprep.subr.bf16.mxu1 %v821_v23  ;;  %v860_v50 = vld [vmem:[#allocation7 + $0x40] sm:$0xff]   ;;  %v862_v52 = vld [vmem:[#allocation7 + $0x48] sm:$0xff]   ;;  %v864_v54 = vld [vmem:[#allocation7 + $0x50] sm:$0xff]   ;;  %s979_s10 = smov [#allocation8]  }
  0x47   :  { %v861_v51 = vld [vmem:[#allocation7] sm:$0xff]   ;;  %v863_v53 = vld [vmem:[#allocation7 + $0x8] sm:$0xff]   ;;  %v865_v55 = vld [vmem:[#allocation7 + $0x10] sm:$0xff]   ;;  %s696_s14 = sshll.u32 %s979_s10, 4  ;;  %s697_s14 = int_to_ptr.vmem [resolvable:$true] %s696_s14 }
  0x48   :  { %471 = vmatpush1.bf16.msra.mxu1 %v823_v25  ;;  %v866_v56 = vld [vmem:[#allocation7 + $0x58] sm:$0xff]   ;;  %v868_v58 = vld [vmem:[#allocation7 + $0x60] sm:$0xff]   ;;  %v870_v60 = vld [vmem:[#allocation7 + $0x68] sm:$0xff]   ;;  %s942_s15 = scalar_lea.vmem %s697_s14, 256  ;;  %p947_p11 = scmp.lt.s32.totalorder %s697_s14, %s697_s14 }
  0x49   :  { %198 = vmatpush1.bf16.msra.mxu0 %v808_v20  ;;  %472 = vmatprep.subr.bf16.mxu1 %v824_v26  ;;  %v867_v57 = vld [vmem:[#allocation7 + $0x18] sm:$0xff]   ;;  %v869_v59 = vld [vmem:[#allocation7 + $0x20] sm:$0xff]   ;;  %v871_v17 = vld [vmem:[#allocation7 + $0x28] sm:$0xff]   ;;  %p943_p10 = scmp.ne.s32.totalorder %s697_s14, %s942_s15  ;;  %p948_p12 = scmp.lt.s32.totalorder %s942_s15, %s942_s15 }
  0x4a   :  { %768 = vmatprep.subr.bf16.mxu0 %v860_v50  ;;  %v238_v62 = vld [vmem:[%s1121_s4] sm:$0x3]  ;;  %v872_v4 = vld [vmem:[#allocation7 + $0x70] sm:$0xff]   ;;  %v874_v19 = vld [vmem:[#allocation7 + $0x78] sm:$0xff]  }
  0x4b   :  { %v243_v0 = vrot.slane %v238_v62, %v242_v61  ;;  %v247_v1 = vrot.slane %v238_v62, %v246_v63  ;;  %v873_v18 = vld [vmem:[#allocation7 + $0x30] sm:$0xff]   ;;  %v875_v20 = vld [vmem:[#allocation7 + $0x38] sm:$0xff]   ;;  %v292_v21 = vld [vmem:[%s1123_s6] sm:$0x3]  ;;  %p949_p13 = por %p948_p12, %p947_p11 }
  0x4c   :  { %473 = vmatpush1.bf16.msra.mxu1 %v826_v27  ;;  %v297_v22 = vrot.slane %v292_v21, %v242_v61  ;;  %v301_v23 = vrot.slane %v292_v21, %v246_v63 }
  0x4d   :  { %474 = vmatprep.subr.bf16.mxu1 %v827_v28  ;;  %p950_p0 = pnand %p949_p13, %p943_p10 }
  0x50   :  { %718 = vmatmul.mubr.msk.bf16.vlgmr.msra.gmra.mrb[0].mxu0 %vm191_vm2, %v811_v24  ;;  %475 = vmatpush1.bf16.msra.mxu1 %v829_v29 }
  0x51   :  { %476 = vmatprep.subr.bf16.mxu1 %v830_v30  ;;  %769 = vmatpush3.bf16.msra.mxu0 %v861_v51 }
  0x52   :  { %770 = vmatprep.subr.bf16.mxu0 %v862_v52 }
  0x54   :  { %477 = vmatpush1.bf16.msra.mxu1 %v832_v31 }
  0x55   :  { %478 = vmatprep.subr.bf16.mxu1 %v833_v32  ;;  %771 = vmatpush3.bf16.msra.mxu0 %v863_v53 }
  0x56   :  { %772 = vmatprep.subr.bf16.mxu0 %v864_v54 }
  0x58   :  { %479 = vmatpush1.bf16.msra.mxu1 %v835_v33 }
  0x59   :  { %480 = vmatprep.subr.bf16.mxu1 %v836_v34  ;;  %773 = vmatpush3.bf16.msra.mxu0 %v865_v55 }
  0x5a   :  { %774 = vmatprep.subr.bf16.mxu0 %v866_v56 }
  0x5c   :  { %481 = vmatpush1.bf16.msra.mxu1 %v838_v35 }
  0x5d   :  { %482 = vmatprep.subr.bf16.mxu1 %v839_v36  ;;  %775 = vmatpush3.bf16.msra.mxu0 %v867_v57 }
  0x5e   :  { %776 = vmatprep.subr.bf16.mxu0 %v868_v58 }
  0x60   :  { %483 = vmatpush1.bf16.msra.mxu1 %v841_v37 }
  0x61   :  { %484 = vmatprep.subr.bf16.mxu1 %v842_v38  ;;  %777 = vmatpush3.bf16.msra.mxu0 %v869_v59 }
  0x62   :  { %778 = vmatprep.subr.bf16.mxu0 %v870_v60 }
  0x64   :  { %485 = vmatpush1.bf16.msra.mxu1 %v844_v39  ;;  %v751_v39 = vld [vmem:[%s1125_s8] ss:$0 sm:$0xff] }
  0x65   :  { %486 = vmatprep.subr.bf16.mxu1 %v845_v40  ;;  %779 = vmatpush3.bf16.msra.mxu0 %v871_v17 }
  0x66   :  { %780 = vmatprep.subr.bf16.mxu0 %v872_v4 }
  0x68   :  { %487 = vmatpush1.bf16.msra.mxu1 %v847_v41 }
  0x69   :  { %488 = vmatprep.subr.bf16.mxu1 %v848_v42  ;;  %781 = vmatpush3.bf16.msra.mxu0 %v873_v18 }
  0x6a   :  { %782 = vmatprep.subr.bf16.mxu0 %v874_v19 }
  0x6c   :  { %489 = vmatpush1.bf16.msra.mxu1 %v850_v43 }
  0x6d   :  { %490 = vmatprep.subr.bf16.mxu1 %v851_v44  ;;  %783 = vmatpush3.bf16.msra.mxu0 %v875_v20 }
  0x70   :  { %491 = vmatpush1.bf16.msra.mxu1 %v853_v45 }
  0x71   :  { %492 = vmatprep.subr.bf16.mxu1 %v854_v46 }
  0x74   :  { %493 = vmatpush1.bf16.msra.mxu1 %v856_v47 }
  0x75   :  { %494 = vmatprep.subr.bf16.mxu1 %v857_v48 }
  0x78   :  { %495 = vmatpush1.bf16.msra.mxu1 %v859_v49 }
 0x123   :  { %v229_v2 = vpop.f32.mrb[0].mxu0 }
 0x124   :  { %v250_v3 = vadd.f32 %v243_v0, %v229_v2  ;;  %v231_v5 = vpop.f32.mrb[1].mxu0 }
 0x125   :  { %v251_v6 = vadd.f32 %v247_v1, %v231_v5  ;;  %v233_v7 = vpop.f32.mrb[2].mxu0 }
 0x126   :  { %v252_v8 = vadd.f32 %v243_v0, %v233_v7  ;;  %v235_v9 = vpop.f32.mrb[3].mxu0  ;;  %v254_v11 = vmax.f32 %v250_v3, 0.0 }
 0x127   :  { %v253_v10 = vadd.f32 %v247_v1, %v235_v9  ;;  %v255_v13 = vmax.f32 %v251_v6, 0.0 }
 0x128   :  { %v256_v12 = vmax.f32 %v252_v8, 0.0 }
 0x129   :  { %v257_v14 = vmax.f32 %v253_v10, 0.0 }
 0x12a   :  { %v258_v15 = vpack.c.bf16 %v256_v12, %v254_v11 }
 0x12b   :  { %v259_v16 = vpack.c.bf16 %v257_v14, %v255_v13 }
 0x12d   :  { %496 = vmatprep.mubr.bf16.mxu1 %v259_v16 }
 0x12e   :  { %497 = vmatmul.mubr.bf16.vlgmr.msra.gmra.mrb[0].mxu1 %v258_v15 }
 0x201   :  { %v498_v24 = vpop.f32.mrb[0].mxu1 }
 0x202   :  { %v499_v25 = vadd.f32 %v498_v24, %v297_v22  ;;  %v500_v26 = vpop.f32.mrb[1].mxu1 }
 0x203   :  { %v501_v27 = vadd.f32 %v500_v26, %v301_v23  ;;  %v502_v28 = vpop.f32.mrb[2].mxu1 }
 0x204   :  { %v503_v29 = vadd.f32 %v502_v28, %v297_v22  ;;  %v504_v30 = vpop.f32.mrb[3].mxu1  ;;  %v507_v32 = vmax.f32 %v499_v25, 0.0 }
 0x205   :  { %v505_v31 = vadd.f32 %v504_v30, %v301_v23  ;;  %v508_v34 = vmax.f32 %v501_v27, 0.0 }
 0x206   :  { %v509_v33 = vmax.f32 %v503_v29, 0.0 }
 0x207   :  { %v510_v35 = vmax.f32 %v505_v31, 0.0 }
 0x208   :  { %v511_v36 = vpack.c.bf16 %v509_v33, %v507_v32 }
 0x209   :  { %v512_v37 = vpack.c.bf16 %v510_v35, %v508_v34 }
 0x20b   :  { %680 = vmatprep.mubr.bf16.mxu0 %v512_v37 }
 0x20c   :  { %681 = vmatmul.mubr.bf16.vlgmr.msra.gmra.mrb[4].mxu0 %v511_v36 }
 0x2df   :  { %v784_v38 = vpop.f32.mrb[4].mxu0 }
 0x2e0   :  { %v785_v40 = vpop.f32.mrb[5].mxu0 }
 0x2e1   :  { %v786_v41 = vadd.f32 %v785_v40, %v784_v38  ;;  %v787_v42 = vpop.f32.mrb[6].mxu0 }
 0x2e2   :  { %v788_v43 = vpop.f32.mrb[7].mxu0 }
 0x2e3   :  { %v683_v44 = vadd.f32 %v786_v41, %v751_v39  ;;  %v789_v45 = vadd.f32 %v788_v43, %v787_v42 }
 0x2e5   :  { %689 = vst [vmem:[#allocation8] sm:$0xff] %v683_v44  ;;  %v686_v46 = vadd.f32 %v789_v45, %v751_v39 }
 0x2e7   :  { %690 = vst [vmem:[#allocation8 + $0x8] sm:$0xff] %v686_v46 }
 0x2e8   :  { %953 = shalt.err (!%p950_p0)
}
 0x2e9   :  { %s954_s17 = scalar_lea.hbm %s1126_s9, 256 }
 0x2ea   :  { %p955_p1 = scmp.ne.s32.totalorder %s1126_s9, %s954_s17  ;;  %p958_p2 = scmp.lt.u32.totalorder %s954_s17, %s1126_s9 }
 0x2ec   :  { %p960_p3 = pnand %p958_p2, %p955_p1 }
 0x2ee   :  { %963 = shalt.err (!%p960_p3)
}
 0x2ef   :  { %702 = dma.vmem_to_hbm [thread:$0]  %s697_s14, 256, %s1126_s9, [#allocation4], %s972_s21, %s972_s21, %s973_s22  }
 0x2f0   :  { %968 = dma.done.wait [#allocation4], 256  }
 0x2f1   :  { %969 = vsyncadd [#allocation4], 4294967040 }
 0x2f2   :  { %706 = vsyncpa [#allocation3], 1 }
 0x2f3   :  { %707 = vsyncpa [#allocation6], 1 }
 0x2f4   :  { %708 = vsyncpa [#allocation4], 1 }

</bundles_post_ra>
